<compile_context>
chip_gen: v6e
topology: v6e:2x2x1
jax: 0.10.0
libtpu: 0.0.40
codegen_flags: <defaults>
</compile_context>

<pallas_src>
import functools
import math

import jax
import jax.numpy as jnp
from jax.experimental import pallas as pl
from jax.experimental.pallas import tpu as pltpu


def _round_up(x, m):
    return ((x + m - 1) // m) * m


def _split_rows(total, max_tile, multi_gran):
    """Balanced row tiling: returns (tile, padded_total, n_tiles)."""
    if total <= max_tile:
        t = _round_up(total, 8)
        return t, t, 1
    n_tiles = -(-total // max_tile)
    t = _round_up(-(-total // n_tiles), multi_gran)
    return t, t * n_tiles, n_tiles


# "NT" dot_general dims: contract the last dim of both operands (q @ k^T style).
_NT_DIMS = (((1,), (1,)), ((), ()))


# ---------------------------------------------------------------------------
# Pallas kernels
# ---------------------------------------------------------------------------

def _encode_block(x, w1, b1, w2, b2):
    """Linear -> tanh -> Linear on a row-major 2D tile (MXU + EUP)."""
    h = jnp.tanh(jnp.dot(x, w1, preferred_element_type=jnp.float32) + b1)
    return jnp.dot(h, w2, preferred_element_type=jnp.float32) + b2


def _ae_loss_kernel(x_ref, w1, b1, w2, b2, w3, b3, w4, b4, out_ref, *, m_valid):
    """AutoEncoder forward + per-tile partial sum of squared reconstruction error."""
    i = pl.program_id(0)
    x = x_ref[...]                                            # (tile_m, F)
    enc = _encode_block(x, w1[...], b1[...], w2[...], b2[...])
    dec = _encode_block(enc, w3[...], b3[...], w4[...], b4[...])

    tile_m = x.shape[0]
    rows = i * tile_m + jax.lax.broadcasted_iota(jnp.int32, (tile_m, 1), 0)
    d = jnp.where(rows < m_valid, x - dec, 0.0)
    out_ref[0] = jnp.sum(d * d, axis=0, keepdims=True)        # (1, F) partial


def _score_tile(x_ref, w1t_ref, b1t_ref, w2u_ref, bias_ref):
    """Lane-dense score row for one (batch, N-tile): shape (1, tile_n)."""
    # h^T = tanh(w1^T @ x^T + b1^T) computed with an NT dot_general so the
    # sample axis lands in lanes without an explicit transpose.
    h = jnp.tanh(
        jax.lax.dot_general(w1t_ref[...], x_ref[0], _NT_DIMS,
                            preferred_element_type=jnp.float32)
        + b1t_ref[...])                                       # (MIDp, tile_n)
    s = jnp.sum(h * w2u_ref[0], axis=0, keepdims=True)        # (1, tile_n)
    return s + bias_ref[0]


def _score_kernel(x_ref, w1t_ref, b1t_ref, w2u_ref, bias_ref, score_ref):
    score_ref[0] = _score_tile(x_ref, w1t_ref, b1t_ref, w2u_ref, bias_ref)


def _pred_loss_kernel(x_ref, w1t_ref, b1t_ref, w2u_ref, bias_ref, real_ref,
                      out_ref, *, n_valid):
    t = pl.program_id(1)
    s = _score_tile(x_ref, w1t_ref, b1t_ref, w2u_ref, bias_ref)
    d = s - real_ref[0]                                       # (1, tile_n)
    tile_n = d.shape[1]
    cols = t * tile_n + jax.lax.broadcasted_iota(jnp.int32, (1, tile_n), 1)
    d = jnp.where(cols < n_valid, d, 0.0)
    out_ref[...] = jnp.broadcast_to(jnp.sum(d * d), (1, 1, 1))


# ---------------------------------------------------------------------------
# Model wrapper
# ---------------------------------------------------------------------------

class CityTransferPallas:
    TILE_ROWS = 4096                    # rows per grid step (f32 block ~512 KiB)
    VMEM_LIMIT = 32 * 1024 * 1024       # portable across v5e/v6e/v7x

    def __init__(self, args, feature_dim, n_grid, key):
        self.args = args
        ae_dim = args.auto_encoder_dim
        mid_dim = math.ceil(math.sqrt(feature_dim * ae_dim))
        self.feature_dim = feature_dim
        self.ae_dim = ae_dim
        self.mid_dim = mid_dim
        self.mid_pad = _round_up(mid_dim, 8)
        self.ae_pad = _round_up(ae_dim, 8)

        ks = jax.random.split(key, 7)

        def lin(k, fin, fout):
            kw, kb = jax.random.split(k)
            bound = 1.0 / math.sqrt(fin)
            w = jax.random.uniform(kw, (fin, fout), jnp.float32, -bound, bound)
            b = jax.random.uniform(kb, (1, fout), jnp.float32, -bound, bound)
            return w, b

        def xavier(k, shape):
            fan_out, fan_in = shape[0], shape[1]
            bound = math.sqrt(6.0 / (fan_in + fan_out))
            return jax.random.uniform(k, shape, jnp.float32, -bound, bound)

        # unpadded parameters (reference semantics, same as nn.Linear / xavier)
        self.w1, self.b1 = lin(ks[0], feature_dim, mid_dim)
        self.w2, self.b2 = lin(ks[1], mid_dim, ae_dim)
        self.w3, self.b3 = lin(ks[2], ae_dim, mid_dim)
        self.w4, self.b4 = lin(ks[3], mid_dim, feature_dim)

        n_ent = len(args.enterprise)
        self.u = xavier(ks[4], (n_ent, ae_dim))
        self.b = xavier(ks[5], (n_ent, 1))
        self.e = xavier(ks[6], (n_grid, 1))

        # zero-padded copies for the kernels (hidden dims -> multiples of 8);
        # padding is numerically inert (zero rows/cols through tanh).
        def pad2(a, rows, cols):
            return jnp.pad(a, ((0, rows - a.shape[0]), (0, cols - a.shape[1])))

        F, MP, AP = feature_dim, self.mid_pad, self.ae_pad
        self.w1p = pad2(self.w1, F, MP)
        self.b1p = pad2(self.b1, 1, MP)
        self.w2p = pad2(self.w2, MP, AP)
        self.b2p = pad2(self.b2, 1, AP)
        self.w3p = pad2(self.w3, AP, MP)
        self.b3p = pad2(self.b3, 1, MP)
        self.w4p = pad2(self.w4, MP, F)
        self.b4p = pad2(self.b4, 1, F)
        self.u_p = pad2(self.u, n_ent, AP)

        # transposed encoder weights for the lane-dense prediction kernels
        self.w1t = self.w1p.T            # (MIDp, F)
        self.b1t = self.b1p.T            # (MIDp, 1)

    # -- helpers -----------------------------------------------------------
    @staticmethod
    def _resident_spec(arr):
        """Full-array block with a constant index map -> stays in VMEM."""
        nd = arr.ndim
        return pl.BlockSpec(arr.shape, lambda *_: (0,) * nd)

    # -- mode: cal_auto_encoder_loss ----------------------------------------
    def cal_auto_encoder_loss(self, grid_feature):
        x = jnp.asarray(grid_feature, jnp.float32).reshape(-1, self.feature_dim)
        m = x.shape[0]
        tile_m, m_pad, n_tiles = _split_rows(m, self.TILE_ROWS, 8)
        if m_pad != m:
            x = jnp.pad(x, ((0, m_pad - m), (0, 0)))

        F, MID, AE = self.feature_dim, self.mid_pad, self.ae_pad
        flops = 2 * m_pad * (F * MID + MID * AE + AE * MID + MID * F) + 4 * m_pad * F
        trans = 2 * m_pad * MID
        bytes_acc = 4 * (m_pad * F + 2 * (F * MID + MID * AE) + 2 * MID + AE + F
                         + n_tiles * F)

        weights = (self.w1p, self.b1p, self.w2p, self.b2p,
                   self.w3p, self.b3p, self.w4p, self.b4p)

        partials = pl.pallas_call(
            functools.partial(_ae_loss_kernel, m_valid=m),
            out_shape=jax.ShapeDtypeStruct((n_tiles, 1, F), jnp.float32),
            grid_spec=pltpu.PrefetchScalarGridSpec(
                num_scalar_prefetch=0,
                grid=(n_tiles,),
                in_specs=[pl.BlockSpec((tile_m, F), lambda i: (i, 0))]
                         + [self._resident_spec(w) for w in weights],
                out_specs=pl.BlockSpec((1, 1, F), lambda i: (i, 0, 0)),
            ),
            compiler_params=pltpu.CompilerParams(
                dimension_semantics=("parallel",),
                vmem_limit_bytes=self.VMEM_LIMIT),
            cost_estimate=pl.CostEstimate(
                flops=flops, transcendentals=trans, bytes_accessed=bytes_acc),
        )(x, *weights)
        return jnp.sum(partials)

    # -- shared prep for prediction kernels ----------------------------------
    def _prep_score(self, enterprise_index, grid_index, grid_feature):
        x = jnp.asarray(grid_feature, jnp.float32)
        gi = jnp.asarray(grid_index, jnp.int32).reshape(-1)
        if x.ndim > 2:
            bsz, n, _ = x.shape
            ei = jnp.asarray(enterprise_index, jnp.int32).reshape(bsz)
        else:
            n = x.shape[0]
            bsz = 1
            x = x[None]
            ei = jnp.asarray(enterprise_index, jnp.int32).reshape(1)

        tile_n, n_pad, n_tiles = _split_rows(n, self.TILE_ROWS, 128)
        if n_pad != n:
            x = jnp.pad(x, ((0, 0), (0, n_pad - n), (0, 0)))

        # Fold the enterprise vector into the encoder's second linear layer:
        #   score = enc . u_e + b_e + e_g = h @ (w2 @ u_e) + (b2 . u_e) + b_e + e_g
        u_e = self.u_p[ei]                                      # (B, AEp)
        w2u = (u_e @ self.w2p.T)[:, :, None]                    # (B, MIDp, 1)
        c = u_e @ self.b2p[0]                                   # (B,)
        bias = (self.b[ei].reshape(bsz, 1) + c.reshape(bsz, 1)
                + self.e[gi].reshape(1, n))                     # (B, N)
        bias = jnp.pad(bias, ((0, 0), (0, n_pad - n)))[:, None, :]   # (B,1,Np)
        return x, w2u, bias, bsz, n, n_pad, tile_n, n_tiles

    def _score_specs(self, tile_n, F):
        MID = self.mid_pad
        return [
            pl.BlockSpec((1, tile_n, F), lambda b, t: (b, t, 0)),    # x
            self._resident_spec(self.w1t),                           # (MIDp, F)
            self._resident_spec(self.b1t),                           # (MIDp, 1)
            pl.BlockSpec((1, MID, 1), lambda b, t: (b, 0, 0)),       # w2u
            pl.BlockSpec((1, 1, tile_n), lambda b, t: (b, 0, t)),    # bias row
        ]

    def _score_cost(self, rows, bsz):
        F, MID = self.feature_dim, self.mid_pad
        flops = 2 * rows * F * MID + 3 * rows * MID + 2 * rows
        trans = rows * MID
        bytes_acc = 4 * (rows * F + 2 * rows + F * MID + 2 * MID
                         + bsz * (MID + 1))
        return flops, trans, bytes_acc

    # -- mode: prediction score / prediction ----------------------------------
    def cal_prediction_score(self, enterprise_index, grid_index, grid_feature):
        x, w2u, bias, bsz, n, n_pad, tile_n, n_tiles = self._prep_score(
            enterprise_index, grid_index, grid_feature)
        F = self.feature_dim
        flops, trans, bytes_acc = self._score_cost(bsz * n_pad, bsz)

        out = pl.pallas_call(
            _score_kernel,
            out_shape=jax.ShapeDtypeStruct((bsz, 1, n_pad), jnp.float32),
            grid_spec=pltpu.PrefetchScalarGridSpec(
                num_scalar_prefetch=0,
                grid=(bsz, n_tiles),
                in_specs=self._score_specs(tile_n, F),
                out_specs=pl.BlockSpec((1, 1, tile_n), lambda b, t: (b, 0, t)),
            ),
            compiler_params=pltpu.CompilerParams(
                dimension_semantics=("parallel", "parallel"),
                vmem_limit_bytes=self.VMEM_LIMIT),
            cost_estimate=pl.CostEstimate(
                flops=flops, transcendentals=trans, bytes_accessed=bytes_acc),
        )(x, self.w1t, self.b1t, w2u, bias)
        return out[:, 0, :n]

    def prediction(self, target_enterprise_index, grid_index, grid_feature):
        score = self.cal_prediction_score(
            target_enterprise_index, grid_index, grid_feature)
        return jnp.squeeze(score)

    # -- mode: cal_prediction_loss --------------------------------------------
    def cal_prediction_loss(self, enterprise_index, grid_index, grid_feature,
                            real_score):
        x, w2u, bias, bsz, n, n_pad, tile_n, n_tiles = self._prep_score(
            enterprise_index, grid_index, grid_feature)
        real = jnp.asarray(real_score, jnp.float32).reshape(bsz, n)
        real = jnp.pad(real, ((0, 0), (0, n_pad - n)))[:, None, :]   # (B,1,Np)

        F = self.feature_dim
        flops, trans, bytes_acc = self._score_cost(bsz * n_pad, bsz)

        in_specs = self._score_specs(tile_n, F) + [
            pl.BlockSpec((1, 1, tile_n), lambda b, t: (b, 0, t)),    # real row
        ]
        partials = pl.pallas_call(
            functools.partial(_pred_loss_kernel, n_valid=n),
            out_shape=jax.ShapeDtypeStruct((bsz * n_tiles, 1, 1), jnp.float32),
            grid_spec=pltpu.PrefetchScalarGridSpec(
                num_scalar_prefetch=0,
                grid=(bsz, n_tiles),
                in_specs=in_specs,
                out_specs=pl.BlockSpec(
                    (1, 1, 1), lambda b, t: (b * n_tiles + t, 0, 0)),
            ),
            compiler_params=pltpu.CompilerParams(
                dimension_semantics=("parallel", "parallel"),
                vmem_limit_bytes=self.VMEM_LIMIT),
            cost_estimate=pl.CostEstimate(
                flops=flops + 3 * bsz * n_pad, transcendentals=trans,
                bytes_accessed=bytes_acc + 4 * bsz * n_pad),
        )(x, self.w1t, self.b1t, w2u, bias, real)
        return jnp.sum(partials)

    # -- torch-style forward dispatch ------------------------------------------
    def __call__(self, mode, *inputs):
        if mode == 'cal_auto_encoder_loss':
            return self.cal_auto_encoder_loss(*inputs)
        elif mode == 'cal_prediction_loss':
            return self.cal_prediction_loss(*inputs)
        elif mode == 'prediction':
            return self.prediction(*inputs)
        else:
            raise ValueError('wrong parameters!')


# ---------------------------------------------------------------------------
# Pure-JAX reference (correctness check)
# ---------------------------------------------------------------------------

def _ref_encode(m, x):
    h = jnp.tanh(x @ m.w1 + m.b1)
    enc = h @ m.w2 + m.b2
    h2 = jnp.tanh(enc @ m.w3 + m.b3)
    dec = h2 @ m.w4 + m.b4
    return enc, dec


if __name__ == "__main__":
    class Args:
        enterprise = ["kfc", "mcdonalds", "burgerking"]
        auto_encoder_dim = 16

    feature_dim = 32
    n_grid = 64

    key = jax.random.PRNGKey(0)
    kparam, kdata = jax.random.split(key)
    model = CityTransferPallas(Args(), feature_dim, n_grid, kparam)

    kd = jax.random.split(kdata, 4)

    # mode 1: auto-encoder reconstruction loss on (n_samples, feature_dim)
    grid_feat_2d = jax.random.normal(kd[0], (16, feature_dim), jnp.float32)
    loss_ae = model('cal_auto_encoder_loss', grid_feat_2d)

    # mode 2: prediction loss with batched 3D grid features (B, N, F)
    B, N = 3, 8
    ent_idx = jnp.array([0, 1, 2], jnp.int32)
    grid_idx = jnp.arange(4, 4 + N, dtype=jnp.int32)
    grid_feat_3d = jax.random.normal(kd[1], (B, N, feature_dim), jnp.float32)
    real_score = jax.random.normal(kd[2], (B, N), jnp.float32)
    loss_pred = model('cal_prediction_loss', ent_idx, grid_idx, grid_feat_3d,
                      real_score)

    # mode 3: prediction with a single target enterprise and 2D features
    grid_feat_pred = jax.random.normal(kd[3], (N, feature_dim), jnp.float32)
    score = model('prediction', 1, grid_idx, grid_feat_pred)

    jax.block_until_ready((loss_ae, loss_pred, score))

    # --- reference checks ---
    _, dec_ref = _ref_encode(model, grid_feat_2d)
    loss_ae_ref = jnp.sum((grid_feat_2d - dec_ref) ** 2)

    enc3_ref, _ = _ref_encode(model, grid_feat_3d)
    score3_ref = (jnp.einsum('bd,bnd->bn', model.u[ent_idx], enc3_ref)
                  + model.b[ent_idx]
                  + model.e[grid_idx].reshape(1, N))
    loss_pred_ref = jnp.sum((score3_ref - real_score) ** 2)

    enc2_ref, _ = _ref_encode(model, grid_feat_pred)
    score_ref = jnp.squeeze(model.u[1:2] @ enc2_ref.T + model.b[1:2]
                            + model.e[grid_idx].reshape(1, N))

    assert jnp.allclose(loss_ae, loss_ae_ref, rtol=1e-3, atol=1e-3), (loss_ae, loss_ae_ref)
    assert jnp.allclose(loss_pred, loss_pred_ref, rtol=1e-3, atol=1e-3), (loss_pred, loss_pred_ref)
    assert jnp.allclose(score, score_ref, rtol=1e-3, atol=1e-3)
    assert score.shape == (N,)

    print("KERNEL_OK")
</pallas_src>

<mosaic_0001>
module attributes {stable_mosaic.version = 11 : i64} {
  func.func @_ae_loss_kernel(%arg0: i32, %arg1: memref<16x32xf32, #tpu.memory_space<vmem>>, %arg2: memref<32x24xf32, #tpu.memory_space<vmem>>, %arg3: memref<1x24xf32, #tpu.memory_space<vmem>>, %arg4: memref<24x16xf32, #tpu.memory_space<vmem>>, %arg5: memref<1x16xf32, #tpu.memory_space<vmem>>, %arg6: memref<16x24xf32, #tpu.memory_space<vmem>>, %arg7: memref<1x24xf32, #tpu.memory_space<vmem>>, %arg8: memref<24x32xf32, #tpu.memory_space<vmem>>, %arg9: memref<1x32xf32, #tpu.memory_space<vmem>>, %arg10: memref<1x1x32xf32, #tpu.memory_space<vmem>>) attributes {dimension_semantics = [#tpu.dimension_semantics<parallel>], iteration_bounds = array<i64: 1>, scalar_prefetch = 0 : i64, scratch_operands = 0 : i64, tpu.core_type = #tpu.core_type<tc>, window_params = [{transform_indices = @transform_0, window_bounds = array<i64: 16, 32>}, {pipeline_mode = #tpu.pipeline_mode<synchronous>, transform_indices = @transform_1, window_bounds = array<i64: 32, 24>}, {pipeline_mode = #tpu.pipeline_mode<synchronous>, transform_indices = @transform_2, window_bounds = array<i64: 1, 24>}, {pipeline_mode = #tpu.pipeline_mode<synchronous>, transform_indices = @transform_3, window_bounds = array<i64: 24, 16>}, {pipeline_mode = #tpu.pipeline_mode<synchronous>, transform_indices = @transform_4, window_bounds = array<i64: 1, 16>}, {pipeline_mode = #tpu.pipeline_mode<synchronous>, transform_indices = @transform_5, window_bounds = array<i64: 16, 24>}, {pipeline_mode = #tpu.pipeline_mode<synchronous>, transform_indices = @transform_6, window_bounds = array<i64: 1, 24>}, {pipeline_mode = #tpu.pipeline_mode<synchronous>, transform_indices = @transform_7, window_bounds = array<i64: 24, 32>}, {pipeline_mode = #tpu.pipeline_mode<synchronous>, transform_indices = @transform_8, window_bounds = array<i64: 1, 32>}, {transform_indices = @transform_9, window_bounds = array<i64: 1, 1, 32>}]} {
    %c0 = arith.constant 0 : index
    %c0_0 = arith.constant 0 : index
    %0 = vector.load %arg1[%c0, %c0_0] : memref<16x32xf32, #tpu.memory_space<vmem>>, vector<16x32xf32>
    %c0_1 = arith.constant 0 : index
    %c0_2 = arith.constant 0 : index
    %1 = vector.load %arg2[%c0_1, %c0_2] : memref<32x24xf32, #tpu.memory_space<vmem>>, vector<32x24xf32>
    %c0_3 = arith.constant 0 : index
    %c0_4 = arith.constant 0 : index
    %2 = vector.load %arg3[%c0_3, %c0_4] : memref<1x24xf32, #tpu.memory_space<vmem>>, vector<1x24xf32>
    %c0_5 = arith.constant 0 : index
    %c0_6 = arith.constant 0 : index
    %3 = vector.load %arg4[%c0_5, %c0_6] : memref<24x16xf32, #tpu.memory_space<vmem>>, vector<24x16xf32>
    %c0_7 = arith.constant 0 : index
    %c0_8 = arith.constant 0 : index
    %4 = vector.load %arg5[%c0_7, %c0_8] : memref<1x16xf32, #tpu.memory_space<vmem>>, vector<1x16xf32>
    %cst = arith.constant dense<0.000000e+00> : vector<16x24xf32>
    %5 = tpu.matmul %0, %1, %cst {dimension_numbers = #tpu.dot_dimension_numbers<[1], [0], [0], [1], [0, 0, 1, 1], [], []>} : vector<16x32xf32>, vector<32x24xf32>, vector<16x24xf32> -> vector<16x24xf32>
    %6 = vector.broadcast %2 : vector<1x24xf32> to vector<16x24xf32>
    %7 = arith.addf %5, %6 : vector<16x24xf32>
    %8 = math.tanh %7 : vector<16x24xf32>
    %cst_9 = arith.constant dense<0.000000e+00> : vector<16x16xf32>
    %9 = tpu.matmul %8, %3, %cst_9 {dimension_numbers = #tpu.dot_dimension_numbers<[1], [0], [0], [1], [0, 0, 1, 1], [], []>} : vector<16x24xf32>, vector<24x16xf32>, vector<16x16xf32> -> vector<16x16xf32>
    %10 = vector.broadcast %4 : vector<1x16xf32> to vector<16x16xf32>
    %11 = arith.addf %9, %10 : vector<16x16xf32>
    %c0_10 = arith.constant 0 : index
    %c0_11 = arith.constant 0 : index
    %12 = vector.load %arg6[%c0_10, %c0_11] : memref<16x24xf32, #tpu.memory_space<vmem>>, vector<16x24xf32>
    %c0_12 = arith.constant 0 : index
    %c0_13 = arith.constant 0 : index
    %13 = vector.load %arg7[%c0_12, %c0_13] : memref<1x24xf32, #tpu.memory_space<vmem>>, vector<1x24xf32>
    %c0_14 = arith.constant 0 : index
    %c0_15 = arith.constant 0 : index
    %14 = vector.load %arg8[%c0_14, %c0_15] : memref<24x32xf32, #tpu.memory_space<vmem>>, vector<24x32xf32>
    %c0_16 = arith.constant 0 : index
    %c0_17 = arith.constant 0 : index
    %15 = vector.load %arg9[%c0_16, %c0_17] : memref<1x32xf32, #tpu.memory_space<vmem>>, vector<1x32xf32>
    %cst_18 = arith.constant dense<0.000000e+00> : vector<16x24xf32>
    %16 = tpu.matmul %11, %12, %cst_18 {dimension_numbers = #tpu.dot_dimension_numbers<[1], [0], [0], [1], [0, 0, 1, 1], [], []>} : vector<16x16xf32>, vector<16x24xf32>, vector<16x24xf32> -> vector<16x24xf32>
    %17 = vector.broadcast %13 : vector<1x24xf32> to vector<16x24xf32>
    %18 = arith.addf %16, %17 : vector<16x24xf32>
    %19 = math.tanh %18 : vector<16x24xf32>
    %cst_19 = arith.constant dense<0.000000e+00> : vector<16x32xf32>
    %20 = tpu.matmul %19, %14, %cst_19 {dimension_numbers = #tpu.dot_dimension_numbers<[1], [0], [0], [1], [0, 0, 1, 1], [], []>} : vector<16x24xf32>, vector<24x32xf32>, vector<16x32xf32> -> vector<16x32xf32>
    %21 = vector.broadcast %15 : vector<1x32xf32> to vector<16x32xf32>
    %22 = arith.addf %20, %21 : vector<16x32xf32>
    %c16_i32 = arith.constant 16 : i32
    %23 = arith.muli %arg0, %c16_i32 : i32
    %24 = tpu.iota {dimensions = array<i32: 0>} : vector<16x1xi32>
    %25 = vector.broadcast %23 : i32 to vector<16x1xi32>
    %26 = arith.addi %25, %24 : vector<16x1xi32>
    %c16_i32_20 = arith.constant 16 : i32
    %27 = vector.broadcast %c16_i32_20 : i32 to vector<16x1xi32>
    %28 = arith.cmpi slt, %26, %27 : vector<16x1xi32>
    %29 = arith.subf %0, %22 : vector<16x32xf32>
    %cst_21 = arith.constant 0.000000e+00 : f32
    %30 = vector.shape_cast %28 : vector<16x1xi1> to vector<16x1xi1>
    %31 = vector.broadcast %30 : vector<16x1xi1> to vector<16x32xi1>
    %32 = vector.broadcast %cst_21 : f32 to vector<16x32xf32>
    %33 = arith.select %31, %29, %32 : vector<16x32xi1>, vector<16x32xf32>
    %34 = arith.mulf %33, %33 : vector<16x32xf32>
    %cst_22 = arith.constant dense<0.000000e+00> : vector<32xf32>
    %35 = vector.multi_reduction <add>, %34, %cst_22 [0] : vector<16x32xf32> to vector<32xf32>
    %36 = vector.shape_cast %35 : vector<32xf32> to vector<1x32xf32>
    %c0_23 = arith.constant 0 : index
    %c0_24 = arith.constant 0 : index
    %c0_25 = arith.constant 0 : index
    %37 = vector.load %arg10[%c0_23, %c0_24, %c0_25] : memref<1x1x32xf32, #tpu.memory_space<vmem>>, vector<1x1x32xf32>
    %38 = vector.shape_cast %37 : vector<1x1x32xf32> to vector<1x32xf32>
    %39 = vector.shape_cast %36 : vector<1x32xf32> to vector<1x1x32xf32>
    tpu.vector_store %arg10[%c0_23, %c0_24, %c0_25], %39 {strides = array<i32>} : memref<1x1x32xf32, #tpu.memory_space<vmem>>, vector<1x1x32xf32>,
    return
  }
  func.func @transform_0(%arg0: i32) -> (i32, i32) {
    %c0_i32 = arith.constant 0 : i32
    %c0_i32_0 = arith.constant 0 : i32
    return %arg0, %c0_i32 : i32, i32
  }
  func.func @transform_1(%arg0: i32) -> (i32, i32) {
    %c0_i32 = arith.constant 0 : i32
    %c0_i32_0 = arith.constant 0 : i32
    %c0_i32_1 = arith.constant 0 : i32
    return %c0_i32, %c0_i32_0 : i32, i32
  }
  func.func @transform_2(%arg0: i32) -> (i32, i32) {
    %c0_i32 = arith.constant 0 : i32
    %c0_i32_0 = arith.constant 0 : i32
    %c0_i32_1 = arith.constant 0 : i32
    return %c0_i32, %c0_i32_0 : i32, i32
  }
  func.func @transform_3(%arg0: i32) -> (i32, i32) {
    %c0_i32 = arith.constant 0 : i32
    %c0_i32_0 = arith.constant 0 : i32
    %c0_i32_1 = arith.constant 0 : i32
    return %c0_i32, %c0_i32_0 : i32, i32
  }
  func.func @transform_4(%arg0: i32) -> (i32, i32) {
    %c0_i32 = arith.constant 0 : i32
    %c0_i32_0 = arith.constant 0 : i32
    %c0_i32_1 = arith.constant 0 : i32
    return %c0_i32, %c0_i32_0 : i32, i32
  }
  func.func @transform_5(%arg0: i32) -> (i32, i32) {
    %c0_i32 = arith.constant 0 : i32
    %c0_i32_0 = arith.constant 0 : i32
    %c0_i32_1 = arith.constant 0 : i32
    return %c0_i32, %c0_i32_0 : i32, i32
  }
  func.func @transform_6(%arg0: i32) -> (i32, i32) {
    %c0_i32 = arith.constant 0 : i32
    %c0_i32_0 = arith.constant 0 : i32
    %c0_i32_1 = arith.constant 0 : i32
    return %c0_i32, %c0_i32_0 : i32, i32
  }
  func.func @transform_7(%arg0: i32) -> (i32, i32) {
    %c0_i32 = arith.constant 0 : i32
    %c0_i32_0 = arith.constant 0 : i32
    %c0_i32_1 = arith.constant 0 : i32
    return %c0_i32, %c0_i32_0 : i32, i32
  }
  func.func @transform_8(%arg0: i32) -> (i32, i32) {
    %c0_i32 = arith.constant 0 : i32
    %c0_i32_0 = arith.constant 0 : i32
    %c0_i32_1 = arith.constant 0 : i32
    return %c0_i32, %c0_i32_0 : i32, i32
  }
  func.func @transform_9(%arg0: i32) -> (i32, i32, i32) {
    %c0_i32 = arith.constant 0 : i32
    %c0_i32_0 = arith.constant 0 : i32
    %c0_i32_1 = arith.constant 0 : i32
    return %arg0, %c0_i32, %c0_i32_0 : i32, i32, i32
  }
}

</mosaic_0001>

<bundles_post_ra>
// kernel: tpu_custom_call.1
= control target key start
LH: loop header
LB: loop body
LE: loop exit
PB: predicated region body
PF: predicated region fallthrough
CT: control target
= control target key end

     0   :  { %vm50_vm0 = vcmask 261120   ;;  %s673_s0 = inlined_call_operand.vmem [shape: f32[16,32], index: 0, kind: input, shape index: {}]   ;;  %s674_s1 = inlined_call_operand.vmem [shape: f32[32,24], index: 1, kind: input, shape index: {}]   ;;  %s675_s2 = inlined_call_operand.vmem [shape: f32[1,24], index: 2, kind: input, shape index: {}]   ;;  %s676_s3 = inlined_call_operand.vmem [shape: f32[24,16], index: 3, kind: input, shape index: {}]   ;;  %s677_s4 = inlined_call_operand.vmem [shape: f32[1,16], index: 4, kind: input, shape index: {}]   ;;  %s678_s5 = inlined_call_operand.vmem [shape: f32[16,24], index: 5, kind: input, shape index: {}]   ;;  %s679_s6 = inlined_call_operand.vmem [shape: f32[1,24], index: 6, kind: input, shape index: {}]   ;;  %s680_s7 = inlined_call_operand.vmem [shape: f32[24,32], index: 7, kind: input, shape index: {}]   ;;  %s681_s8 = inlined_call_operand.vmem [shape: f32[1,32], index: 8, kind: input, shape index: {}]   ;;  %s682_s9 = inlined_call_operand.hbm [shape: f32[1,1,32], index: 9, kind: output, shape index: {}]  }
   0x1   :  { %v38_v0 = vld [vmem:[%s674_s1 + $0x18] sm:$0xff]  ;;  %v37_v1 = vld [vmem:[%s674_s1 + $0x10] sm:$0xff]  ;;  %v609_v2 = vld [vmem:[%s673_s0] sm:$0xff] }
   0x2   :  { %482 = vmatprep.subr.mxu0 %v38_v0  ;;  %v36_v3 = vld [vmem:[%s674_s1 + $0x8] sm:$0xff]  ;;  %490 = vmatprep.mubr.msk.f32.mxu0 %vm50_vm0, %v609_v2 }
   0x3   :  { %483 = vmatpush3.msra.mxu0 %v38_v0 }
   0x4   :  { %14 = vsyncpa [#allocation3], 0  ;;  %484 = vmatprep.subr.mxu0 %v37_v1  ;;  %v35_v4 = vld [vmem:[%s674_s1] sm:$0xff]  ;;  %v622_v5 = vld [vmem:[%s673_s0 + $0x8] sm:$0xff]  ;;  %vm140_vm1 = vcmask 195584   ;;  %vm235_vm2 = vcmask 130048  }
   0x5   :  { %485 = vmatpush3.msra.mxu0 %v37_v1  ;;  %v42_v6 = vld [vmem:[%s676_s3 + $0x10] sm:$0xff]  ;;  %v41_v7 = vld [vmem:[%s676_s3 + $0x8] sm:$0xff]  ;;  %v40_v8 = vld [vmem:[%s676_s3] sm:$0xff]  ;;  %vm434_vm3 = vcmask 253952  }
   0x6   :  { %486 = vmatprep.subr.mxu0 %v36_v3  ;;  %493 = vmatprep.subr.mxu1 %v42_v6  ;;  %v450_v9 = vld [vmem:[%s675_s2] ss:$0 sm:$0xff]  ;;  %v223_v16 = vld [vmem:[%s678_s5 + $0x8] sm:$0xff]  ;;  %v227_v23 = vld [vmem:[%s680_s7 + $0x10] sm:$0xff] }
   0x7   :  { %487 = vmatpush3.msra.mxu0 %v36_v3  ;;  %494 = vmatpush3.msra.mxu1 %v42_v6  ;;  %v222_v17 = vld [vmem:[%s678_s5] sm:$0xff]  ;;  %v226_v24 = vld [vmem:[%s680_s7 + $0x8] sm:$0xff] }
   0x8   :  { %488 = vmatprep.subr.mxu0 %v35_v4  ;;  %495 = vmatprep.subr.mxu1 %v41_v7  ;;  %v453_v19 = vld [vmem:[%s677_s4] ss:$0 sm:$0xff] }
   0x9   :  { %489 = vmatpush3.msra.mxu0 %v35_v4  ;;  %496 = vmatpush3.msra.mxu1 %v41_v7  ;;  %v225_v25 = vld [vmem:[%s680_s7] sm:$0xff] }
   0xa   :  { %491 = vmatmul.mubr.msk.f32.vlgmr.msra.gmra.mxu0 %vm50_vm0, %v622_v5  ;;  %497 = vmatprep.subr.mxu1 %v40_v8  ;;  %v456_v26 = vld [vmem:[%s679_s6] ss:$0 sm:$0xff]  ;;  %s549_s6 = smov [#allocation2]  }
   0xb   :  { %498 = vmatpush3.msra.mxu1 %v40_v8  ;;  %509 = vmatprep.subr.mxu0 %v227_v23  ;;  %v459_v33 = vld [vmem:[%s681_s8] ss:$0 sm:$0xff]  ;;  %s442_s8 = sshll.u32 %s549_s6, 4  ;;  %s443_s8 = int_to_ptr.vmem [resolvable:$true] %s442_s8 }
   0xc   :  { %502 = vmatprep.subr.mxu1 %v223_v16  ;;  %510 = vmatpush3.msra.mxu0 %v227_v23  ;;  %s527_s17 = scalar_lea.vmem %s443_s8, 16  ;;  %s531_s18 = scalar_lea.vmem %s443_s8, 32 }
   0xd   :  { %511 = vmatprep.subr.mxu0 %v226_v24  ;;  %p528_p0 = scmp.ne.s32.totalorder %s443_s8, %s527_s17  ;;  %p532_p1 = scmp.lt.s32.totalorder %s443_s8, %s443_s8 }
   0xe   :  { %512 = vmatpush3.msra.mxu0 %v226_v24  ;;  %p533_p2 = scmp.lt.s32.totalorder %s531_s18, %s527_s17 }
   0xf   :  { %513 = vmatprep.subr.mxu0 %v225_v25 }
  0x10   :  { %514 = vmatpush3.msra.mxu0 %v225_v25  ;;  %p534_p3 = por %p533_p2, %p532_p1 }
  0x12   :  { %p535_p4 = pnand %p534_p3, %p528_p0 }
  0xca   :  { %v492_v10 = vpop.f32.mrf.mxu0 }
  0xcb   :  { %v129_v11 = vadd.f32 %v492_v10, %v450_v9 }
  0xcc   :  { %v123_v12 = vpop.f32.mrf.mxu0 }
  0xcd   :  { %v124_v13 = vadd.f32 %v450_v9, %v123_v12 }
  0xcf   :  { %519 = vtanh.f32 %v124_v13 }
  0xd0   :  { %521 = vtanh.f32 %v129_v11 }
  0xdc   :  { %v520_v14 = vpop.eup %519 }
  0xdd   :  { %v522_v15 = vpop.eup %521  ;;  %499 = vmatprep.mubr.msk.f32.mxu1 %vm140_vm1, %v520_v14 }
  0xde   :  { %500 = vmatmul.mubr.msk.f32.vlgmr.msra.gmra.mxu1 %vm140_vm1, %v522_v15 }
  0xdf   :  { %503 = vmatpush3.msra.mxu1 %v223_v16 }
  0xe0   :  { %504 = vmatprep.subr.mxu1 %v222_v17 }
  0xe1   :  { %505 = vmatpush3.msra.mxu1 %v222_v17 }
 0x19e   :  { %v501_v18 = vpop.f32.mrf.mxu1 }
 0x19f   :  { %v219_v22 = vadd.f32 %v501_v18, %v453_v19 }
 0x1a0   :  { %v213_v20 = vpop.f32.mrf.mxu1 }
 0x1a1   :  { %v214_v21 = vadd.f32 %v453_v19, %v213_v20 }
 0x1a3   :  { %506 = vmatprep.mubr.msk.f32.mxu1 %vm235_vm2, %v214_v21 }
 0x1a4   :  { %507 = vmatmul.mubr.msk.f32.vlgmr.msra.gmra.mxu1 %vm235_vm2, %v219_v22 }
 0x264   :  { %v508_v27 = vpop.f32.mrf.mxu1 }
 0x265   :  { %v314_v28 = vadd.f32 %v508_v27, %v456_v26 }
 0x266   :  { %v308_v29 = vpop.f32.mrf.mxu1 }
 0x267   :  { %v309_v30 = vadd.f32 %v456_v26, %v308_v29 }
 0x269   :  { %523 = vtanh.f32 %v309_v30 }
 0x26a   :  { %525 = vtanh.f32 %v314_v28 }
 0x276   :  { %v524_v31 = vpop.eup %523 }
 0x277   :  { %v526_v32 = vpop.eup %525  ;;  %515 = vmatprep.mubr.msk.f32.mxu0 %vm140_vm1, %v524_v31 }
 0x278   :  { %516 = vmatmul.mubr.msk.f32.vlgmr.msra.gmra.mxu0 %vm140_vm1, %v526_v32 }
 0x338   :  { %v517_v34 = vpop.f32.mrf.mxu0 }
 0x339   :  { %v403_v35 = vadd.f32 %v517_v34, %v459_v33 }
 0x33a   :  { %v397_v36 = vpop.f32.mrf.mxu0 }
 0x33b   :  { %v416_v37 = vsub.f32 %v622_v5, %v403_v35  ;;  %v398_v38 = vadd.f32 %v459_v33, %v397_v36 }
 0x33d   :  { %v424_v39 = vmul.f32 %v416_v37, %v416_v37  ;;  %v415_v40 = vsub.f32 %v609_v2, %v398_v38 }
 0x33f   :  { %v423_v41 = vmul.f32 %v415_v40, %v415_v40  ;;  %v426_v42 = vsel %vm50_vm0, %v424_v39, 0.0 }
 0x341   :  { %v425_v43 = vsel %vm50_vm0, %v423_v41, 0.0 }
 0x342   :  { %v427_v44 = vadd.f32 %v426_v42, %v425_v43 }
 0x344   :  { %v428_v45 = vrot.slane %v427_v44, 4 }
 0x346   :  { %v429_v46 = vadd.f32 %v428_v45, %v427_v44 }
 0x348   :  { %v430_v47 = vrot.slane %v429_v46, 2 }
 0x34a   :  { %v431_v48 = vadd.f32 %v430_v47, %v429_v46 }
 0x34c   :  { %v432_v49 = vrot.slane %v431_v48, 1 }
 0x34e   :  { %v433_v50 = vadd.f32 %v432_v49, %v431_v48 }
 0x350   :  { %435 = vst.msk [vmem:[#allocation2] sm:$0x1] %vm434_vm3, %v433_v50 }
 0x351   :  { %538 = shalt.err (!%p535_p4)
}
 0x352   :  { %445 = dma.vmem_to_hbm [thread:$0]  %s443_s8, 16, %s682_s9, [#allocation3]  }
 0x353   :  { %547 = dma.done.wait [#allocation3], 16  }
 0x354   :  { %548 = vsyncadd [#allocation3], 4294967280 }
 0x355   :  { %449 = vsyncpa [#allocation3], 1 }

</bundles_post_ra>
